<compile_context>
chip_gen: v7x
topology: tpu7x:2x2x1
jax: 0.10.0
libtpu: 0.0.40
codegen_flags: <defaults>
</compile_context>

<pallas_src>
import jax
import jax.numpy as jnp
from jax.experimental import pallas as pl
from jax.experimental.pallas import tpu as pltpu


def _round_up(x, m):
    return ((x + m - 1) // m) * m


def _pick_b_blk(nB, max_blk=8):
    """Batch elements per grid step.

    Larger B_BLK flattens more rows into the matmul M dim (amortizes the
    W/protos weight loads and the per-grid-step overhead), but the grid extent
    nB // B_BLK is kept even and >= 2 where possible so v7x's two TensorCores
    both get work on the "parallel" axis.  max_blk caps the per-step VMEM
    footprint (B_BLK * nC * HWp feature block).
    """
    best = 1
    for b in range(1, min(nB, max_blk) + 1):
        if nB % b:
            continue
        g = nB // b
        if g >= 2 and g % 2 == 0:
            best = b
    return best


def _make_fused_kernel(nP, B_BLK, nT, nPp):
    """Fused sample() + loop() kernel; B_BLK batch elements per grid step."""

    def kernel(a_ref, f_ref, w_ref, b_ref, p_ref, scal_ref,
               anorm_ref, out_ref, attn_ref):
        # a_ref:  (B_BLK, nT, HWp) f32      f_ref: (B_BLK, nC, HWp) bf16
        # w_ref:  (nC, nC) bf16  [in, out]  (pre-transposed in wrapper)
        # b_ref:  (1, nC) f32               p_ref: (nC, nPp) bf16 (pre-T, padded)
        # scal_ref: (2,) f32 SMEM  [ALPHA, UNK_SCR]
        # anorm_ref: (B_BLK, nT, HWp) f32   out_ref/attn_ref: (B_BLK, nT, nPp) f32

        # ---- sample(): normalize attention over the spatial dim (exact f32) ----
        a = a_ref[...]                                            # (B, nT, HWp)
        s = jnp.sum(a, axis=-1, keepdims=True)                    # (B, nT, 1)
        an = a / s                                                 # matches torch
        anorm_ref[...] = an                                        # lane-dense store

        # C[b,t,c] = sum_hw an[b,t,hw] * f[b,c,hw]  (zero-padded cols add 0)
        c = jax.lax.dot_general(
            an.astype(f_ref.dtype), f_ref[...],
            (((2,), (2,)), ((0,), (0,))),
            preferred_element_type=jnp.float32)                    # (B, nT, nC)
        # dropout(p=0.3) is identity in eval mode.
        # TODO(synk): training-mode dropout (pltpu.prng_* + mask) not implemented.

        # ---- loop(): Linear -> proto scores -> cosine -> ALPHA scale ----
        nC_ = c.shape[-1]
        c2 = c.reshape(B_BLK * nT, nC_)                            # flatten M dim

        # hidden = C @ W^T + b ; W already transposed to (in, out): (M,K)@(K,N).
        hidden = jax.lax.dot_general(
            c2.astype(w_ref.dtype), w_ref[...],
            (((1,), (0,)), ((), ())),
            preferred_element_type=jnp.float32) + b_ref[...]       # (M, nC)

        # cfPredict = hidden @ protos^T ; protos pre-transposed to (nC, nPp).
        cfp = jax.lax.dot_general(
            hidden.astype(p_ref.dtype), p_ref[...],
            (((1,), (0,)), ((), ())),
            preferred_element_type=jnp.float32)                    # (M, nPp)

        # cfCos = cfPredict / (||hidden|| + 0.0009)  -- exact f32, eps outside sqrt.
        hnorm = jnp.sqrt(jnp.sum(hidden * hidden, axis=-1, keepdims=True))
        cfcos = cfp / (hnorm + 0.0009)

        alpha = scal_ref[0]
        unk = scal_ref[1]
        M = B_BLK * nT
        col = jax.lax.broadcasted_iota(jnp.int32, (M, nPp), 1)
        is_unk_col = col == nP                                     # UNK class slot
        out_ref[...] = jnp.where(is_unk_col, unk, cfp * alpha).reshape(
            B_BLK, nT, nPp)
        attn_ref[...] = jnp.where(is_unk_col, unk, cfcos).reshape(
            B_BLK, nT, nPp)

    return kernel


def init_params(key, num_channel):
    k1, k2, k3, k4 = jax.random.split(key, 4)

    def normed_init(k):
        d = jax.random.uniform(k, (1, num_channel), dtype=jnp.float32)
        return d / jnp.linalg.norm(d, axis=-1, keepdims=True)

    return {
        "STA": normed_init(k1),
        "UNK": normed_init(k2),
        "UNK_SCR": jnp.zeros((1, 1), jnp.float32),
        "ALPHA": jnp.ones((1, 1), jnp.float32),
        # context_free_pred: Linear(num_channel, num_channel), weight is (out, in)
        "W": (jax.random.normal(k3, (num_channel, num_channel), jnp.float32)
              / jnp.sqrt(jnp.float32(num_channel))),
        "b": 0.01 * jax.random.normal(k4, (num_channel,), jnp.float32),
    }


def decoupled_text_decoder_forward(feature, protos, A, params):
    """Test-path forward: returns (outRes, outLength, attentionMap, A_norm)."""
    nB, nC, nH, nW = feature.shape
    nT = A.shape[1]
    HW = nH * nW
    nP = protos.shape[0]

    HWp = _round_up(HW, 128)          # lane-dense spatial contraction & stores
    nPp = _round_up(nP + 1, 128)      # lane-dense class axis (incl. UNK column)
    B_BLK = _pick_b_blk(nB)
    n_steps = nB // B_BLK

    # Attention stays f32 (exact normalization + anorm output); feature / W /
    # protos are cast to bf16 for the MXU (f32 accumulation in-kernel).
    a_flat = A.reshape(nB, nT, HW).astype(jnp.float32)
    feat = feature.reshape(nB, nC, HW).astype(jnp.bfloat16)
    if HWp != HW:
        pad = ((0, 0), (0, 0), (0, HWp - HW))
        a_flat = jnp.pad(a_flat, pad)
        feat = jnp.pad(feat, pad)

    # Grid-invariant weights, pre-transposed ONCE so the kernel contracts dim 0.
    w_t = params["W"].T.astype(jnp.bfloat16)                     # (in, out)
    bias = params["b"].reshape(1, nC).astype(jnp.float32)
    protos_t = jnp.zeros((nC, nPp), jnp.bfloat16)
    protos_t = protos_t.at[:, :nP].set(protos.T.astype(jnp.bfloat16))

    scal = jnp.stack([params["ALPHA"][0, 0],
                      params["UNK_SCR"][0, 0]]).astype(jnp.float32)   # (2,) SMEM

    kernel = _make_fused_kernel(nP, B_BLK, nT, nPp)

    anorm_pad, out_pad, attn_pad = pl.pallas_call(
        kernel,
        out_shape=(jax.ShapeDtypeStruct((nB, nT, HWp), jnp.float32),
                   jax.ShapeDtypeStruct((nB, nT, nPp), jnp.float32),
                   jax.ShapeDtypeStruct((nB, nT, nPp), jnp.float32)),
        grid=(n_steps,),
        in_specs=[pl.BlockSpec((B_BLK, nT, HWp), lambda b: (b, 0, 0)),
                  pl.BlockSpec((B_BLK, nC, HWp), lambda b: (b, 0, 0)),
                  pl.BlockSpec((nC, nC), lambda b: (0, 0)),
                  pl.BlockSpec((1, nC), lambda b: (0, 0)),
                  pl.BlockSpec((nC, nPp), lambda b: (0, 0)),
                  pl.BlockSpec(memory_space=pltpu.MemorySpace.SMEM)],
        out_specs=(pl.BlockSpec((B_BLK, nT, HWp), lambda b: (b, 0, 0)),
                   pl.BlockSpec((B_BLK, nT, nPp), lambda b: (b, 0, 0)),
                   pl.BlockSpec((B_BLK, nT, nPp), lambda b: (b, 0, 0))),
        compiler_params=pltpu.CompilerParams(
            dimension_semantics=("parallel",)),
    )(a_flat, feat, w_t, bias, protos_t, scal)

    # Tiny final layout glue back to torch's (nT, nB, nP+1) / (nB, nT, nH, nW).
    out_res = jnp.transpose(out_pad, (1, 0, 2))[:, :, :nP + 1]
    attn_map = jnp.transpose(attn_pad, (1, 0, 2))[:, :, :nP + 1]
    a_norm = anorm_pad[:, :, :HW].reshape(nB, nT, nH, nW)

    # prob_length (plain-JAX glue; data-dependent control flow vectorized):
    res = jnp.argmax(out_res, axis=-1)                  # (nT, nB)
    is_zero = res == 0
    any_zero = jnp.any(is_zero, axis=0)
    first = jnp.argmax(is_zero, axis=0)
    out_length = jnp.where(any_zero, first + 1, nT + 1).astype(jnp.float32)

    # TODO(synk): predict() relies on the external, undefined `scatter_cvt`
    # (label-space scatter) and a per-sample variable-length packing loop; it
    # is not reproduced here.

    return out_res, out_length, attn_map, a_norm


if __name__ == "__main__":
    nB, nC, nH, nW = 2, 32, 8, 8
    nT, nP = 8, 16

    key = jax.random.PRNGKey(0)
    kp, kf, ka, kpr = jax.random.split(key, 4)

    params = init_params(kp, nC)
    feature = jax.random.normal(kf, (nB, nC, nH, nW), jnp.float32)
    # attention maps: strictly positive so the spatial-sum normalization is valid
    A = jax.random.uniform(ka, (nB, nT, nH, nW), jnp.float32,
                           minval=0.1, maxval=1.0)
    protos = jax.random.normal(kpr, (nP, nC), jnp.float32)

    fwd = jax.jit(decoupled_text_decoder_forward)
    out_res, out_length, attn_map, a_norm = fwd(feature, protos, A, params)
    jax.block_until_ready((out_res, out_length, attn_map, a_norm))

    assert out_res.shape == (nT, nB, nP + 1)
    assert attn_map.shape == (nT, nB, nP + 1)
    assert out_length.shape == (nB,)
    assert a_norm.shape == (nB, nT, nH, nW)
    print("KERNEL_OK")
</pallas_src>

<mosaic_0001>
module attributes {stable_mosaic.version = 11 : i64} {
  func.func @kernel(%arg0: i32, %arg1: memref<1x8x128xf32, #tpu.memory_space<vmem>>, %arg2: memref<1x32x128xbf16, #tpu.memory_space<vmem>>, %arg3: memref<32x32xbf16, #tpu.memory_space<vmem>>, %arg4: memref<1x32xf32, #tpu.memory_space<vmem>>, %arg5: memref<32x128xbf16, #tpu.memory_space<vmem>>, %arg6: memref<2xf32, #tpu.memory_space<smem>>, %arg7: memref<1x8x128xf32, #tpu.memory_space<vmem>>, %arg8: memref<1x8x128xf32, #tpu.memory_space<vmem>>, %arg9: memref<1x8x128xf32, #tpu.memory_space<vmem>>) attributes {dimension_semantics = [#tpu.dimension_semantics<parallel>], iteration_bounds = array<i64: 2>, scalar_prefetch = 0 : i64, scratch_operands = 0 : i64, tpu.core_type = #tpu.core_type<tc>, window_params = [{transform_indices = @transform_0, window_bounds = array<i64: 1, 8, 128>}, {transform_indices = @transform_1, window_bounds = array<i64: 1, 32, 128>}, {pipeline_mode = #tpu.pipeline_mode<synchronous>, transform_indices = @transform_2, window_bounds = array<i64: 32, 32>}, {pipeline_mode = #tpu.pipeline_mode<synchronous>, transform_indices = @transform_3, window_bounds = array<i64: 1, 32>}, {pipeline_mode = #tpu.pipeline_mode<synchronous>, transform_indices = @transform_4, window_bounds = array<i64: 32, 128>}, {transform_indices = @transform_5, window_bounds = array<i64: 2>}, {transform_indices = @transform_6, window_bounds = array<i64: 1, 8, 128>}, {transform_indices = @transform_7, window_bounds = array<i64: 1, 8, 128>}, {transform_indices = @transform_8, window_bounds = array<i64: 1, 8, 128>}]} {
    %c0 = arith.constant 0 : index
    %c0_0 = arith.constant 0 : index
    %c0_1 = arith.constant 0 : index
    %0 = vector.load %arg1[%c0, %c0_0, %c0_1] : memref<1x8x128xf32, #tpu.memory_space<vmem>>, vector<1x8x128xf32>
    %cst = arith.constant dense<0.000000e+00> : vector<1x8xf32>
    %1 = vector.multi_reduction <add>, %0, %cst [2] : vector<1x8x128xf32> to vector<1x8xf32>
    %2 = vector.shape_cast %1 : vector<1x8xf32> to vector<1x8x1xf32>
    %3 = vector.broadcast %2 : vector<1x8x1xf32> to vector<1x8x128xf32>
    %4 = arith.divf %0, %3 : vector<1x8x128xf32>
    %c0_2 = arith.constant 0 : index
    %c0_3 = arith.constant 0 : index
    %c0_4 = arith.constant 0 : index
    %5 = vector.load %arg7[%c0_2, %c0_3, %c0_4] : memref<1x8x128xf32, #tpu.memory_space<vmem>>, vector<1x8x128xf32>
    tpu.vector_store %arg7[%c0_2, %c0_3, %c0_4], %4 {strides = array<i32>} : memref<1x8x128xf32, #tpu.memory_space<vmem>>, vector<1x8x128xf32>,
    %6 = arith.truncf %4 : vector<1x8x128xf32> to vector<1x8x128xbf16>
    %c0_5 = arith.constant 0 : index
    %c0_6 = arith.constant 0 : index
    %c0_7 = arith.constant 0 : index
    %7 = vector.load %arg2[%c0_5, %c0_6, %c0_7] : memref<1x32x128xbf16, #tpu.memory_space<vmem>>, vector<1x32x128xbf16>
    %cst_8 = arith.constant dense<0.000000e+00> : vector<1x8x32xf32>
    %8 = tpu.matmul %6, %7, %cst_8 {dimension_numbers = #tpu.dot_dimension_numbers<[2], [2], [1], [1], [0, 0, 0, 1, 1, 1], [0], [0]>} : vector<1x8x128xbf16>, vector<1x32x128xbf16>, vector<1x8x32xf32> -> vector<1x8x32xf32>
    %9 = vector.shape_cast %8 : vector<1x8x32xf32> to vector<8x32xf32>
    %10 = arith.truncf %9 : vector<8x32xf32> to vector<8x32xbf16>
    %c0_9 = arith.constant 0 : index
    %c0_10 = arith.constant 0 : index
    %11 = vector.load %arg3[%c0_9, %c0_10] : memref<32x32xbf16, #tpu.memory_space<vmem>>, vector<32x32xbf16>
    %cst_11 = arith.constant dense<0.000000e+00> : vector<8x32xf32>
    %12 = tpu.matmul %10, %11, %cst_11 {dimension_numbers = #tpu.dot_dimension_numbers<[1], [0], [0], [1], [0, 0, 1, 1], [], []>} : vector<8x32xbf16>, vector<32x32xbf16>, vector<8x32xf32> -> vector<8x32xf32>
    %c0_12 = arith.constant 0 : index
    %c0_13 = arith.constant 0 : index
    %13 = vector.load %arg4[%c0_12, %c0_13] : memref<1x32xf32, #tpu.memory_space<vmem>>, vector<1x32xf32>
    %14 = vector.broadcast %13 : vector<1x32xf32> to vector<8x32xf32>
    %15 = arith.addf %12, %14 : vector<8x32xf32>
    %16 = arith.truncf %15 : vector<8x32xf32> to vector<8x32xbf16>
    %c0_14 = arith.constant 0 : index
    %c0_15 = arith.constant 0 : index
    %17 = vector.load %arg5[%c0_14, %c0_15] : memref<32x128xbf16, #tpu.memory_space<vmem>>, vector<32x128xbf16>
    %cst_16 = arith.constant dense<0.000000e+00> : vector<8x128xf32>
    %18 = tpu.matmul %16, %17, %cst_16 {dimension_numbers = #tpu.dot_dimension_numbers<[1], [0], [0], [1], [0, 0, 1, 1], [], []>} : vector<8x32xbf16>, vector<32x128xbf16>, vector<8x128xf32> -> vector<8x128xf32>
    %19 = arith.mulf %15, %15 : vector<8x32xf32>
    %cst_17 = arith.constant dense<0.000000e+00> : vector<8xf32>
    %20 = vector.multi_reduction <add>, %19, %cst_17 [1] : vector<8x32xf32> to vector<8xf32>
    %21 = vector.shape_cast %20 : vector<8xf32> to vector<8x1xf32>
    %22 = math.sqrt %21 : vector<8x1xf32>
    %cst_18 = arith.constant 8.99999984E-4 : f32
    %23 = vector.broadcast %cst_18 : f32 to vector<8x1xf32>
    %24 = arith.addf %22, %23 : vector<8x1xf32>
    %25 = vector.broadcast %24 : vector<8x1xf32> to vector<8x128xf32>
    %26 = arith.divf %18, %25 : vector<8x128xf32>
    %c0_19 = arith.constant 0 : index
    %27 = memref.load %arg6[%c0_19] : memref<2xf32, #tpu.memory_space<smem>>
    %c1 = arith.constant 1 : index
    %28 = memref.load %arg6[%c1] : memref<2xf32, #tpu.memory_space<smem>>
    %29 = tpu.iota {dimensions = array<i32: 1>} : vector<8x128xi32>
    %c16_i32 = arith.constant 16 : i32
    %30 = vector.broadcast %c16_i32 : i32 to vector<8x128xi32>
    %31 = arith.cmpi eq, %29, %30 : vector<8x128xi32>
    %32 = vector.broadcast %27 : f32 to vector<8x128xf32>
    %33 = arith.mulf %18, %32 : vector<8x128xf32>
    %34 = vector.broadcast %28 : f32 to vector<8x128xf32>
    %35 = arith.select %31, %34, %33 : vector<8x128xi1>, vector<8x128xf32>
    %36 = vector.shape_cast %35 : vector<8x128xf32> to vector<1x8x128xf32>
    %c0_20 = arith.constant 0 : index
    %c0_21 = arith.constant 0 : index
    %c0_22 = arith.constant 0 : index
    %37 = vector.load %arg8[%c0_20, %c0_21, %c0_22] : memref<1x8x128xf32, #tpu.memory_space<vmem>>, vector<1x8x128xf32>
    tpu.vector_store %arg8[%c0_20, %c0_21, %c0_22], %36 {strides = array<i32>} : memref<1x8x128xf32, #tpu.memory_space<vmem>>, vector<1x8x128xf32>,
    %38 = vector.broadcast %28 : f32 to vector<8x128xf32>
    %39 = arith.select %31, %38, %26 : vector<8x128xi1>, vector<8x128xf32>
    %40 = vector.shape_cast %39 : vector<8x128xf32> to vector<1x8x128xf32>
    %c0_23 = arith.constant 0 : index
    %c0_24 = arith.constant 0 : index
    %c0_25 = arith.constant 0 : index
    %41 = vector.load %arg9[%c0_23, %c0_24, %c0_25] : memref<1x8x128xf32, #tpu.memory_space<vmem>>, vector<1x8x128xf32>
    tpu.vector_store %arg9[%c0_23, %c0_24, %c0_25], %40 {strides = array<i32>} : memref<1x8x128xf32, #tpu.memory_space<vmem>>, vector<1x8x128xf32>,
    return
  }
  func.func @transform_0(%arg0: i32) -> (i32, i32, i32) {
    %c0_i32 = arith.constant 0 : i32
    %c0_i32_0 = arith.constant 0 : i32
    %c0_i32_1 = arith.constant 0 : i32
    return %arg0, %c0_i32, %c0_i32_0 : i32, i32, i32
  }
  func.func @transform_1(%arg0: i32) -> (i32, i32, i32) {
    %c0_i32 = arith.constant 0 : i32
    %c0_i32_0 = arith.constant 0 : i32
    %c0_i32_1 = arith.constant 0 : i32
    return %arg0, %c0_i32, %c0_i32_0 : i32, i32, i32
  }
  func.func @transform_2(%arg0: i32) -> (i32, i32) {
    %c0_i32 = arith.constant 0 : i32
    %c0_i32_0 = arith.constant 0 : i32
    %c0_i32_1 = arith.constant 0 : i32
    return %c0_i32, %c0_i32_0 : i32, i32
  }
  func.func @transform_3(%arg0: i32) -> (i32, i32) {
    %c0_i32 = arith.constant 0 : i32
    %c0_i32_0 = arith.constant 0 : i32
    %c0_i32_1 = arith.constant 0 : i32
    return %c0_i32, %c0_i32_0 : i32, i32
  }
  func.func @transform_4(%arg0: i32) -> (i32, i32) {
    %c0_i32 = arith.constant 0 : i32
    %c0_i32_0 = arith.constant 0 : i32
    %c0_i32_1 = arith.constant 0 : i32
    return %c0_i32, %c0_i32_0 : i32, i32
  }
  func.func @transform_5(%arg0: i32) -> i32 {
    %c0_i32 = arith.constant 0 : i32
    %c0_i32_0 = arith.constant 0 : i32
    return %c0_i32 : i32
  }
  func.func @transform_6(%arg0: i32) -> (i32, i32, i32) {
    %c0_i32 = arith.constant 0 : i32
    %c0_i32_0 = arith.constant 0 : i32
    %c0_i32_1 = arith.constant 0 : i32
    return %arg0, %c0_i32, %c0_i32_0 : i32, i32, i32
  }
  func.func @transform_7(%arg0: i32) -> (i32, i32, i32) {
    %c0_i32 = arith.constant 0 : i32
    %c0_i32_0 = arith.constant 0 : i32
    %c0_i32_1 = arith.constant 0 : i32
    return %arg0, %c0_i32, %c0_i32_0 : i32, i32, i32
  }
  func.func @transform_8(%arg0: i32) -> (i32, i32, i32) {
    %c0_i32 = arith.constant 0 : i32
    %c0_i32_0 = arith.constant 0 : i32
    %c0_i32_1 = arith.constant 0 : i32
    return %arg0, %c0_i32, %c0_i32_0 : i32, i32, i32
  }
}

</mosaic_0001>

<bundles_post_ra>
// kernel: decoupled_text_decoder_forward.1
= control target key start
LH: loop header
LB: loop body
LE: loop exit
PB: predicated region body
PF: predicated region fallthrough
CT: control target
= control target key end

     0   :  { %14 = vsyncpa [#allocation3], 0  ;;  %s880_s27 = smov 0   ;;  %s947_s0 = inlined_call_operand.vmem [shape: f32[2,8,128], index: 0, kind: input, shape index: {}]   ;;  %s948_s1 = inlined_call_operand.vmem [shape: bf16[2,32,128], index: 1, kind: input, shape index: {}]   ;;  %s949_s2 = inlined_call_operand.vmem [shape: bf16[32,32], index: 2, kind: input, shape index: {}]   ;;  %s950_s3 = inlined_call_operand.vmem [shape: f32[1,32], index: 3, kind: input, shape index: {}]   ;;  %s951_s4 = inlined_call_operand.vmem [shape: bf16[32,128], index: 4, kind: input, shape index: {}]   ;;  %s952_s5 = inlined_call_operand.vmem [shape: f32[2], index: 5, kind: input, shape index: {}]   ;;  %s953_s6 = inlined_call_operand.vmem [shape: f32[2,8,128], index: 6, kind: output, shape index: {0}]   ;;  %s954_s7 = inlined_call_operand.vmem [shape: f32[2,8,128], index: 7, kind: output, shape index: {1}]   ;;  %s955_s8 = inlined_call_operand.vmem [shape: f32[2,8,128], index: 8, kind: output, shape index: {2}]  }
   0x1 LB: > { %s713_s28 = sadd.s32 4294967295, %s830_s27   ;;  %p715_p0 = scmp.ge.s32.totalorder %s830_s27, 1  ;;  %s830_s27 = sphi %s880_s27, %s20_s27  }
   0x2   : > { %p239_p1 = scmp.lt.s32.totalorder %s830_s27, 3  ;;  %s261_s9 = sshll.u32 %s952_s5, 4  ;;  %s262_s9 = int_to_ptr.vmem [resolvable:$true] %s261_s9 }
   0x3   : > { %p780_p3 = scmp.eq.s32.totalorder %s713_s28, 0  ;;  %s805_s11 = scalar_lea.vmem %s262_s9, 16 }
   0x4   : > { %p891_p2 = pnand %p715_p0, %p239_p1  ;;  %p806_p6 = scmp.ne.s32.totalorder %s262_s9, %s805_s11 }
   0x5   : > { %p813_p10 = scmp.lt.s32.totalorder %s262_s9, %s262_s9  ;;  %p814_p11 = scmp.lt.s32.totalorder %s805_s11, %s805_s11 }
   0x6   : > { %p776_p4 = pneg %p891_p2 }
   0x7   : > { %p815_p12 = por %p814_p11, %p813_p10 }
   0x8   : > { %p777_p5 = pnand %p780_p3, %p776_p4 }
   0xa   : > { %p807_p7 = pneg %p777_p5 }
   0xc   : > { %p808_p8 = pnand %p807_p7, %p806_p6 }
   0xe   : > { %p809_p9 = pneg %p808_p8 }
  0x10   : > { %p816_p13 = pnand %p815_p12, %p809_p9 }
  0x12   : > { %819 = shalt.err (!%p816_p13)
}
  0x13   : > { %s832_s12 = smov [#allocation2]   ;;  %289 = sbr.rel (%p891_p2) target bundleno = 838 (0x346), region = 44 }
  0x14   : > { %779 = dma.vmem_to_smem (!%p777_p5), %s262_s9, 16, %s832_s12, [#allocation3]  }
  0x1a   : > { %825 = dma.done.wait (%p780_p3), [#allocation3], 16  }
  0x1b   : > { %827 = vsyncadd (%p780_p3), [#allocation3], 4294967280 }
  0x1c   : > { %295 = sfence }
  0x1d   : > { %p335_p0 = scmp.lt.s32.totalorder %s713_s28, 1  ;;  %v833_v0 = vmov 0.0   ;;  %vm834_vm0 = vmmov 0   ;;  %v795_v4 = vld [vmem:[%s949_s2] sm:$0xff]   ;;  %v796_v9 = vld [vmem:[%s949_s2 + $0x8] sm:$0xff]   ;;  %vm444_vm1 = vcmask 261120   ;;  %v564_v33 = vlaneseq }
  0x1e   : > { %748 = vmatprep.subr.bf16.mxu0 %v833_v0  ;;  %756 = vmatprep.subr.bf16.mxu1 %v833_v0  ;;  %v797_v11 = vld [vmem:[%s951_s4] sm:$0xff]   ;;  %v798_v16 = vld [vmem:[%s951_s4 + $0x8] sm:$0xff]   ;;  %s562_s14 = sld [smem:[#allocation2]]  ;;  %s735_s15 = sld [smem:[#allocation2 + $0x1]] }
  0x1f   : > { %s958_s28 = smov (!%p335_p0, %s713_s28), 1  ;;  %752 = vmatprep.mubr.msk.bf16.mxu0 %vm834_vm0, %v833_v0  ;;  %760 = vmatprep.mubr.msk.bf16.mxu1 %vm834_vm0, %v833_v0  ;;  %v728_v17 = vld [vmem:[%s950_s3] ss:$0 sm:$0xff]  ;;  %v565_v34 = vand.u32 127, %v564_v33 }
  0x20   : > { %s902_s13 = sshll.u32 %s958_s28, 3  ;;  %s738_s17 = sshll.u32 %s958_s28, 4  ;;  %757 = vmatpush3.bf16.msra.mxu1 %v795_v4 }
  0x21   : > { %s338_s16 = scalar_lea.vmem %s947_s0, %s902_s13  ;;  %s343_s20 = scalar_lea.vmem %s948_s1, %s738_s17  ;;  %758 = vmatprep.subr.bf16.mxu1 %v833_v0  ;;  %vm566_vm4 = vcmp.eq.s32.totalorder %v565_v34, 16 }
  0x22   : > { %v357_v1 = vld [vmem:[%s338_s16] sm:$0xff]  ;;  %v794_v3 = vld [vmem:[%s343_s20 + $0x8] sm:$0xff]   ;;  %s347_s25 = scalar_lea.vmem %s953_s6, %s902_s13  ;;  %s351_s18 = scalar_lea.vmem %s954_s7, %s902_s13 }
  0x23   : > { %358 = vadd.xlane.f32.xlu0 %v357_v1  ;;  %v793_v2 = vld [vmem:[%s343_s20] sm:$0xff]   ;;  %s355_s21 = scalar_lea.vmem %s955_s8, %s902_s13 }
  0x24   : > { %749 = vmatpush3.bf16.xpose.msra.mxu0 %v793_v2  ;;  %759 = vmatpush3.bf16.msra.mxu1 %v796_v9  ;;  %v567_v35 = vstv %s562_s14  ;;  %v569_v38 = vstv %s735_s15 }
  0x25   : > { %750 = vmatprep.subr.bf16.mxu0 %v833_v0  ;;  %764 = vmatprep.subr.bf16.mxu1 %v833_v0 }
  0x2c   : > { %751 = vmatpush3.bf16.xpose.msra.mxu0 %v794_v3 }
  0xb0   : > { %v359_v5 = vpop.xlane.xlu0 %358 }
  0xb1   : > { %799 = vrcp.f32 %v359_v5 }
  0xbb   : > { %v800_v6 = vpop.eup %799 }
  0xbc   : > { %v361_v7 = vmul.f32 %v800_v6, %v357_v1 }
  0xbe   : > { %362 = vst [vmem:[%s347_s25] sm:$0xff] %v361_v7  ;;  %v363_v8 = vpack.c.bf16 %v361_v7, %v361_v7 }
  0xc0   : > { %753 = vmatmul.mubr.bf16.vlgmr.msra.gmra.mrb[0].mxu0 %v363_v8 }
 0x193   : > { %v414_v10 = vpop.f32.mrb[0].mxu0 }
 0x194   : > { %v420_v12 = vpack.c.bf16 %v414_v10, %v414_v10  ;;  %v754_v13 = vpop.f32.mrb[1].mxu0 }
 0x195   : > { %v417_v14 = vpop.f32.mrb[2].mxu0 }
 0x196   : > { %v755_v15 = vpop.f32.mrb[3].mxu0  ;;  %761 = vmatmul.mubr.msk.bf16.vlgmr.msra.gmra.mrb[0].mxu1 %vm444_vm1, %v420_v12 }
 0x197   : > { %765 = vmatpush3.bf16.msra.mxu1 %v797_v11  ;;  %768 = vmatprep.mubr.msk.bf16.mxu1 %vm834_vm0, %v833_v0 }
 0x198   : > { %766 = vmatprep.subr.bf16.mxu1 %v833_v0 }
 0x19b   : > { %767 = vmatpush3.bf16.msra.mxu1 %v798_v16 }
 0x269   : > { %v482_v18 = vpop.f32.mrb[0].mxu1 }
 0x26a   : > { %v483_v19 = vadd.f32 %v728_v17, %v482_v18  ;;  %v762_v20 = vpop.f32.mrb[1].mxu1 }
 0x26b   : > { %v485_v21 = vpop.f32.mrb[2].mxu1 }
 0x26c   : > { %v488_v22 = vpack.c.bf16 %v483_v19, %v483_v19  ;;  %v763_v23 = vpop.f32.mrb[3].mxu1  ;;  %v548_v24 = vmul.f32 %v483_v19, %v483_v19 }
 0x26e   : > { %769 = vmatmul.mubr.msk.bf16.vlgmr.msra.gmra.mrb[4].mxu1 %vm444_vm1, %v488_v22  ;;  %v549_v25 = vsel %vm444_vm1, %v548_v24, 0.0 }
 0x26f   : > { %550 = vadd.xlane.f32.xlu0 %v549_v25 }
 0x2fc   : > { %v551_v26 = vpop.xlane.xlu0 %550 }
 0x2fd   : > { %801 = vrsqrt.f32 %v551_v26  ;;  %vm554_vm2 = vcmp.eq.f32.partialorder %v551_v26, inf  ;;  %v557_v30 = vand.u32 2147483648, %v551_v26  ;;  %vm556_vm3 = vcmp.eq.f32.partialorder %v551_v26, 0.0 }
 0x307   : > { %v802_v27 = vpop.eup %801 }
 0x308   : > { %v553_v28 = vmul.f32 %v802_v27, %v551_v26 }
 0x30a   : > { %v555_v29 = vsel %vm554_vm2, %v551_v26, %v553_v28 }
 0x30b   : > { %v558_v31 = vsel %vm556_vm3, %v557_v30, %v555_v29 }
 0x30c   : > { %v559_v32 = vadd.f32 0.0009, %v558_v31 }
 0x30e   : > { %803 = vrcp.f32 %v559_v32 }
 0x318   : > { %v804_v36 = vpop.eup %803 }
 0x341   : > { %v542_v37 = vpop.f32.mrb[4].mxu1 }
 0x342   : > { %v561_v39 = vmul.f32 %v804_v36, %v542_v37  ;;  %v568_v40 = vmul.f32 %v567_v35, %v542_v37  ;;  %v770_v41 = vpop.f32.mrb[5].mxu1 }
 0x343   : > { %v545_v42 = vpop.f32.mrb[6].mxu1 }
 0x344   : > { %v570_v43 = vsel %vm566_vm4, %v569_v38, %v568_v40  ;;  %v572_v44 = vsel %vm566_vm4, %v569_v38, %v561_v39  ;;  %v771_v45 = vpop.f32.mrb[7].mxu1 }
 0x345   : > { %571 = vst [vmem:[%s351_s18] sm:$0xff] %v570_v43  ;;  %573 = vst [vmem:[%s355_s21] sm:$0xff] %v572_v44 }
 0x346 PF: > { %s20_s27 = sadd.s32 1, %s830_s27  }
 0x347   : > { %p17_p1 = scmp.ge.s32.totalorder %s20_s27, 4  }
 0x349   :  { %19 = sbr.rel (!%p17_p1) target bundleno = 1 (0x1), region = 106 }
 0x350   :  { %621 = vsyncpa [#allocation3], 1 }
 0x351   :  { %623 = vsyncpa [#allocation3 + $0x1], 1 }

</bundles_post_ra>
